<compile_context>
chip_gen: v7x
topology: tpu7x:2x2x1
jax: 0.10.0
libtpu: 0.0.40
codegen_flags: <defaults>
</compile_context>

<pallas_src>
import jax
import jax.numpy as jnp
from jax.experimental import pallas as pl
from jax.experimental.pallas import tpu as pltpu


def _pgmc_kernel(x_ref, n_ref, o_ref):
    # x_ref, n_ref: (B, H, W) VMEM blocks (native dtype).
    # o_ref: (1, 8, 128) VMEM per-block partial-sum output.
    x = x_ref[...].astype(jnp.float32)   # (B, H, W)
    t = n_ref[...].astype(jnp.float32)   # (B, H, W)

    # vertical (height) gradient squared sum (per plane; never crosses planes)
    dh = x[:, 1:, :] - x[:, :-1, :]
    s_h = jnp.sum(dh * dh)

    # horizontal (width) gradient squared sum
    dw = x[:, :, 1:] - x[:, :, :-1]
    s_w = jnp.sum(dw * dw)

    # smooth-L1 (Huber, beta=1) between out_train and noise, summed
    diff = jnp.abs(x - t)
    sl1 = jnp.where(diff < 1.0, 0.5 * diff * diff, diff - 0.5)
    s_l = jnp.sum(sl1)

    # Pack the three scalar partials into lanes 0..2 of row 0 of an (8, 128)
    # lane-dense output block; everything else is zero.
    rows = jax.lax.broadcasted_iota(jnp.int32, (8, 128), 0)
    lanes = jax.lax.broadcasted_iota(jnp.int32, (8, 128), 1)
    first_row = rows == 0
    plane = jnp.where(
        first_row & (lanes == 0), s_h,
        jnp.where(
            first_row & (lanes == 1), s_w,
            jnp.where(first_row & (lanes == 2), s_l, jnp.float32(0.0)),
        ),
    )
    o_ref[0] = plane


def _partial_sums(x, t):
    """x, t: (N*C, H, W), native dtype.  Returns (h_gmc, w_gmc, sl1_sum) f32."""
    nc, h, w = x.shape
    itemsize = x.dtype.itemsize
    plane_bytes = h * w * itemsize

    # Pick B so each input block is ~2 MiB (amortizes the ~0.35 us per-step
    # overhead while keeping 2 inputs x 2 pipeline buffers well under the
    # smallest default scoped VMEM limit).
    target_bytes = 2 * 1024 * 1024
    b = max(1, min(nc, target_bytes // max(plane_bytes, 1)))
    num_blocks = -(-nc // b)
    padded_nc = num_blocks * b

    if padded_nc != nc:
        # Zero padding contributes exactly 0 to all three partial sums.
        x = jnp.concatenate(
            [x, jnp.zeros((padded_nc - nc, h, w), dtype=x.dtype)], axis=0)
        t = jnp.concatenate(
            [t, jnp.zeros((padded_nc - nc, h, w), dtype=t.dtype)], axis=0)

    # Only raise the scoped-VMEM limit if a single plane is so large that the
    # double-buffered footprint would exceed conservative defaults.
    cp_kwargs = dict(dimension_semantics=("parallel",))
    est_vmem = 4 * b * plane_bytes + (2 << 20)
    if est_vmem > (12 << 20):
        cp_kwargs["vmem_limit_bytes"] = int(min(2 * est_vmem, 48 << 20))
    # TODO(synk): for extremely large single planes (>> scoped VMEM), tile
    # along H with halo handling instead of relying on a larger VMEM limit.

    out = pl.pallas_call(
        _pgmc_kernel,
        out_shape=jax.ShapeDtypeStruct((num_blocks, 8, 128), jnp.float32),
        grid_spec=pltpu.PrefetchScalarGridSpec(
            num_scalar_prefetch=0,
            grid=(num_blocks,),
            in_specs=[
                pl.BlockSpec((b, h, w), lambda i: (i, 0, 0)),
                pl.BlockSpec((b, h, w), lambda i: (i, 0, 0)),
            ],
            out_specs=pl.BlockSpec((1, 8, 128), lambda i: (i, 0, 0)),
        ),
        compiler_params=pltpu.CompilerParams(**cp_kwargs),
    )(x, t)

    h_gmc = jnp.sum(out[:, 0, 0])
    w_gmc = jnp.sum(out[:, 0, 1])
    sl1_sum = jnp.sum(out[:, 0, 2])
    return h_gmc, w_gmc, sl1_sum


def pgmc_loss(out_train, noise, imgn_train):
    """Pallas implementation of PGMC_loss.forward.

    out_train, noise, imgn_train: (N, C, H, W) arrays. imgn_train is used only
    for its batch size (as in the PyTorch reference).
    """
    n, c, h, w = out_train.shape
    # Keep native dtype (no wrapper upcast); kernel casts to f32 internally.
    x = out_train.reshape(n * c, h, w)
    t = noise.reshape(n * c, h, w)

    h_gmc, w_gmc, sl1_sum = _partial_sums(x, t)

    count_h = c * (h - 1) * w   # _tensor_size(out_train[:, :, 1:, :])
    count_w = c * h * (w - 1)   # _tensor_size(out_train[:, :, :, 1:])
    gmcloss = h_gmc / count_h + w_gmc / count_w

    smooth_l1 = sl1_sum / (imgn_train.shape[0] * 2)

    return 0.01 * gmcloss + smooth_l1


def _reference(out_train, noise, imgn_train):
    """Pure-JAX reference for validation."""
    x = out_train.astype(jnp.float32)
    t = noise.astype(jnp.float32)
    n, c, h, w = x.shape
    count_h = c * (h - 1) * w
    count_w = c * h * (w - 1)
    h_gmc = jnp.sum((x[:, :, 1:, :] - x[:, :, :-1, :]) ** 2)
    w_gmc = jnp.sum((x[:, :, :, 1:] - x[:, :, :, :-1]) ** 2)
    gmcloss = h_gmc / count_h + w_gmc / count_w
    diff = jnp.abs(x - t)
    sl1 = jnp.where(diff < 1.0, 0.5 * diff ** 2, diff - 0.5)
    smooth = jnp.sum(sl1) / (imgn_train.shape[0] * 2)
    return 0.01 * gmcloss + smooth


if __name__ == "__main__":
    key = jax.random.PRNGKey(0)
    k1, k2, k3 = jax.random.split(key, 3)

    N, C, H, W = 2, 4, 16, 16
    out_train = jax.random.normal(k1, (N, C, H, W), dtype=jnp.float32)
    noise = jax.random.normal(k2, (N, C, H, W), dtype=jnp.float32)
    imgn_train = jax.random.normal(k3, (N, C, H, W), dtype=jnp.float32)

    loss = pgmc_loss(out_train, noise, imgn_train)
    loss = jax.block_until_ready(loss)

    ref = _reference(out_train, noise, imgn_train)
    assert jnp.allclose(loss, ref, rtol=1e-5, atol=1e-5), (loss, ref)

    print("KERNEL_OK")
</pallas_src>

<mosaic_0001>
module attributes {stable_mosaic.version = 11 : i64} {
  func.func @_pgmc_kernel(%arg0: i32, %arg1: memref<8x16x16xf32, #tpu.memory_space<vmem>>, %arg2: memref<8x16x16xf32, #tpu.memory_space<vmem>>, %arg3: memref<1x8x128xf32, #tpu.memory_space<vmem>>) attributes {dimension_semantics = [#tpu.dimension_semantics<parallel>], iteration_bounds = array<i64: 1>, scalar_prefetch = 0 : i64, scratch_operands = 0 : i64, tpu.core_type = #tpu.core_type<tc>, window_params = [{transform_indices = @transform_0, window_bounds = array<i64: 8, 16, 16>}, {transform_indices = @transform_1, window_bounds = array<i64: 8, 16, 16>}, {transform_indices = @transform_2, window_bounds = array<i64: 1, 8, 128>}]} {
    %c0 = arith.constant 0 : index
    %c0_0 = arith.constant 0 : index
    %c0_1 = arith.constant 0 : index
    %0 = vector.load %arg1[%c0, %c0_0, %c0_1] : memref<8x16x16xf32, #tpu.memory_space<vmem>>, vector<8x16x16xf32>
    %c0_2 = arith.constant 0 : index
    %c0_3 = arith.constant 0 : index
    %c0_4 = arith.constant 0 : index
    %1 = vector.load %arg2[%c0_2, %c0_3, %c0_4] : memref<8x16x16xf32, #tpu.memory_space<vmem>>, vector<8x16x16xf32>
    %2 = vector.extract_strided_slice %0 {offsets = [0, 1, 0], sizes = [8, 15, 16], strides = [1, 1, 1]} : vector<8x16x16xf32> to vector<8x15x16xf32>
    %3 = vector.extract_strided_slice %0 {offsets = [0, 0, 0], sizes = [8, 15, 16], strides = [1, 1, 1]} : vector<8x16x16xf32> to vector<8x15x16xf32>
    %4 = arith.subf %2, %3 : vector<8x15x16xf32>
    %5 = arith.mulf %4, %4 : vector<8x15x16xf32>
    %6 = vector.shape_cast %5 : vector<8x15x16xf32> to vector<1x8x15x16xf32>
    %cst = arith.constant dense<0.000000e+00> : vector<1xf32>
    %7 = vector.multi_reduction <add>, %6, %cst [1, 2, 3] : vector<1x8x15x16xf32> to vector<1xf32>
    %8 = vector.shape_cast %7 : vector<1xf32> to vector<1x1x1x1xf32>
    %9 = vector.extract %8[0, 0, 0, 0] : f32 from vector<1x1x1x1xf32>
    %10 = vector.extract_strided_slice %0 {offsets = [0, 0, 1], sizes = [8, 16, 15], strides = [1, 1, 1]} : vector<8x16x16xf32> to vector<8x16x15xf32>
    %11 = vector.extract_strided_slice %0 {offsets = [0, 0, 0], sizes = [8, 16, 15], strides = [1, 1, 1]} : vector<8x16x16xf32> to vector<8x16x15xf32>
    %12 = arith.subf %10, %11 : vector<8x16x15xf32>
    %13 = arith.mulf %12, %12 : vector<8x16x15xf32>
    %14 = vector.shape_cast %13 : vector<8x16x15xf32> to vector<1x8x16x15xf32>
    %cst_5 = arith.constant dense<0.000000e+00> : vector<1xf32>
    %15 = vector.multi_reduction <add>, %14, %cst_5 [1, 2, 3] : vector<1x8x16x15xf32> to vector<1xf32>
    %16 = vector.shape_cast %15 : vector<1xf32> to vector<1x1x1x1xf32>
    %17 = vector.extract %16[0, 0, 0, 0] : f32 from vector<1x1x1x1xf32>
    %18 = arith.subf %0, %1 : vector<8x16x16xf32>
    %19 = math.absf %18 : vector<8x16x16xf32>
    %cst_6 = arith.constant 1.000000e+00 : f32
    %20 = vector.broadcast %cst_6 : f32 to vector<8x16x16xf32>
    %21 = arith.cmpf olt, %19, %20 : vector<8x16x16xf32>
    %cst_7 = arith.constant 5.000000e-01 : f32
    %22 = vector.broadcast %cst_7 : f32 to vector<8x16x16xf32>
    %23 = arith.mulf %22, %19 : vector<8x16x16xf32>
    %24 = arith.mulf %23, %19 : vector<8x16x16xf32>
    %cst_8 = arith.constant 5.000000e-01 : f32
    %25 = vector.broadcast %cst_8 : f32 to vector<8x16x16xf32>
    %26 = arith.subf %19, %25 : vector<8x16x16xf32>
    %27 = arith.select %21, %24, %26 : vector<8x16x16xi1>, vector<8x16x16xf32>
    %28 = vector.shape_cast %27 : vector<8x16x16xf32> to vector<1x8x16x16xf32>
    %cst_9 = arith.constant dense<0.000000e+00> : vector<1xf32>
    %29 = vector.multi_reduction <add>, %28, %cst_9 [1, 2, 3] : vector<1x8x16x16xf32> to vector<1xf32>
    %30 = vector.shape_cast %29 : vector<1xf32> to vector<1x1x1x1xf32>
    %31 = vector.extract %30[0, 0, 0, 0] : f32 from vector<1x1x1x1xf32>
    %32 = tpu.iota {dimensions = array<i32: 0>} : vector<8x128xi32>
    %33 = tpu.iota {dimensions = array<i32: 1>} : vector<8x128xi32>
    %c0_i32 = arith.constant 0 : i32
    %34 = vector.broadcast %c0_i32 : i32 to vector<8x128xi32>
    %35 = arith.cmpi eq, %32, %34 : vector<8x128xi32>
    %c0_i32_10 = arith.constant 0 : i32
    %36 = vector.broadcast %c0_i32_10 : i32 to vector<8x128xi32>
    %37 = arith.cmpi eq, %33, %36 : vector<8x128xi32>
    %38 = arith.andi %35, %37 : vector<8x128xi1>
    %c1_i32 = arith.constant 1 : i32
    %39 = vector.broadcast %c1_i32 : i32 to vector<8x128xi32>
    %40 = arith.cmpi eq, %33, %39 : vector<8x128xi32>
    %41 = arith.andi %35, %40 : vector<8x128xi1>
    %c2_i32 = arith.constant 2 : i32
    %42 = vector.broadcast %c2_i32 : i32 to vector<8x128xi32>
    %43 = arith.cmpi eq, %33, %42 : vector<8x128xi32>
    %44 = arith.andi %35, %43 : vector<8x128xi1>
    %cst_11 = arith.constant 0.000000e+00 : f32
    %45 = vector.broadcast %31 : f32 to vector<8x128xf32>
    %46 = vector.broadcast %cst_11 : f32 to vector<8x128xf32>
    %47 = arith.select %44, %45, %46 : vector<8x128xi1>, vector<8x128xf32>
    %48 = vector.broadcast %17 : f32 to vector<8x128xf32>
    %49 = arith.select %41, %48, %47 : vector<8x128xi1>, vector<8x128xf32>
    %50 = vector.broadcast %9 : f32 to vector<8x128xf32>
    %51 = arith.select %38, %50, %49 : vector<8x128xi1>, vector<8x128xf32>
    %c0_12 = arith.constant 0 : index
    %c0_13 = arith.constant 0 : index
    %c0_14 = arith.constant 0 : index
    %52 = vector.load %arg3[%c0_12, %c0_13, %c0_14] : memref<1x8x128xf32, #tpu.memory_space<vmem>>, vector<1x8x128xf32>
    %53 = vector.shape_cast %52 : vector<1x8x128xf32> to vector<8x128xf32>
    %54 = vector.shape_cast %51 : vector<8x128xf32> to vector<1x8x128xf32>
    tpu.vector_store %arg3[%c0_12, %c0_13, %c0_14], %54 {strides = array<i32>} : memref<1x8x128xf32, #tpu.memory_space<vmem>>, vector<1x8x128xf32>,
    return
  }
  func.func @transform_0(%arg0: i32) -> (i32, i32, i32) {
    %c0_i32 = arith.constant 0 : i32
    %c0_i32_0 = arith.constant 0 : i32
    %c0_i32_1 = arith.constant 0 : i32
    return %arg0, %c0_i32, %c0_i32_0 : i32, i32, i32
  }
  func.func @transform_1(%arg0: i32) -> (i32, i32, i32) {
    %c0_i32 = arith.constant 0 : i32
    %c0_i32_0 = arith.constant 0 : i32
    %c0_i32_1 = arith.constant 0 : i32
    return %arg0, %c0_i32, %c0_i32_0 : i32, i32, i32
  }
  func.func @transform_2(%arg0: i32) -> (i32, i32, i32) {
    %c0_i32 = arith.constant 0 : i32
    %c0_i32_0 = arith.constant 0 : i32
    %c0_i32_1 = arith.constant 0 : i32
    return %arg0, %c0_i32, %c0_i32_0 : i32, i32, i32
  }
}

</mosaic_0001>

<bundles_post_ra>
// kernel: tpu_custom_call.1
= control target key start
LH: loop header
LB: loop body
LE: loop exit
PB: predicated region body
PF: predicated region fallthrough
CT: control target
= control target key end

     0   :  { %7 = vsyncpa [#allocation3], 0  ;;  %s1057_s0 = inlined_call_operand.hbm [shape: f32[8,16,16], index: 0, kind: input, shape index: {}]   ;;  %s1058_s1 = inlined_call_operand.hbm [shape: f32[8,16,16], index: 1, kind: input, shape index: {}]   ;;  %s1059_s2 = inlined_call_operand.hbm [shape: f32[1,8,128], index: 2, kind: output, shape index: {}]  }
   0x1   :  { %8 = vsyncpa [#allocation6], 0 }
   0x2   :  { %9 = vsyncpa [#allocation4], 0  ;;  %s732_s9 = smov [#allocation2]   ;;  %s660_s13 = scalar_lea.hbm %s1057_s0, 2048 }
   0x3   :  { %s15_s10 = sshll.u32 %s732_s9, 4  ;;  %p661_p0 = scmp.ne.s32.totalorder %s1057_s0, %s660_s13  ;;  %s16_s10 = int_to_ptr.vmem [resolvable:$true] %s15_s10 }
   0x4   :  { %p664_p1 = scmp.lt.u32.totalorder %s660_s13, %s1057_s0 }
   0x6   :  { %p666_p2 = pnand %p664_p1, %p661_p0 }
   0x8   :  { %669 = shalt.err (!%p666_p2)
}
   0x9   :  { %s670_s18 = scalar_lea.vmem %s16_s10, 2048  ;;  %p675_p4 = scmp.lt.s32.totalorder %s16_s10, %s16_s10 }
   0xa   :  { %p671_p3 = scmp.ne.s32.totalorder %s16_s10, %s670_s18  ;;  %p676_p5 = scmp.lt.s32.totalorder %s670_s18, %s670_s18 }
   0xc   :  { %p677_p6 = por %p676_p5, %p675_p4 }
   0xe   :  { %p678_p7 = pnand %p677_p6, %p671_p3 }
  0x10   :  { %681 = shalt.err (!%p678_p7)
}
  0x11   :  { %s733_s19 = smov 128   ;;  %s734_s20 = smov 8  }
  0x12   :  { %21 = dma.hbm_to_vmem [thread:$0]  %s1057_s0, 2048, %s16_s10, [#allocation3], %s733_s19, %s733_s19, %s734_s20  }
  0x13   :  { %s735_s23 = smov [#allocation5]   ;;  %s682_s27 = scalar_lea.hbm %s1058_s1, 2048 }
  0x14   :  { %s27_s24 = sshll.u32 %s735_s23, 4  ;;  %p683_p8 = scmp.ne.s32.totalorder %s1058_s1, %s682_s27  ;;  %s28_s24 = int_to_ptr.vmem [resolvable:$true] %s27_s24 }
  0x15   :  { %p686_p9 = scmp.lt.u32.totalorder %s682_s27, %s1058_s1 }
  0x17   :  { %p688_p10 = pnand %p686_p9, %p683_p8 }
  0x19   :  { %691 = shalt.err (!%p688_p10)
}
  0x1a   :  { %s692_s4 = scalar_lea.vmem %s28_s24, 2048  ;;  %p697_p12 = scmp.lt.s32.totalorder %s28_s24, %s28_s24 }
  0x1b   :  { %p693_p11 = scmp.ne.s32.totalorder %s28_s24, %s692_s4  ;;  %p698_p13 = scmp.lt.s32.totalorder %s692_s4, %s692_s4 }
  0x1d   :  { %p699_p0 = por %p698_p13, %p697_p12 }
  0x1f   :  { %p700_p1 = pnand %p699_p0, %p693_p11 }
  0x21   :  { %703 = shalt.err (!%p700_p1)
}
  0x22   :  { %33 = dma.hbm_to_vmem [thread:$0]  %s1058_s1, 2048, %s28_s24, [#allocation6], %s733_s19, %s733_s19, %s734_s20  }
  0x23   :  { %726 = dma.done.wait [#allocation3], 2048  }
  0x24   :  { %727 = vsyncadd [#allocation3], 4294965248 }
  0x25   :  { %728 = dma.done.wait [#allocation6], 2048  }
  0x26   :  { %729 = vsyncadd [#allocation6], 4294965248  ;;  %v778_v0 = vld [vmem:[#allocation2] sm:$0xff]  ;;  %v780_v1 = vld [vmem:[#allocation2 + $0x10] sm:$0xff]  ;;  %s736_s6 = smov 1   ;;  %vm88_vm0 = vcmask 1040384  }
  0x27   :  { %260 = vrot.lane.b32.xlu0 %v778_v0, %s736_s6  ;;  %264 = vrot.lane.b32.xlu1 %v780_v1, %s736_s6  ;;  %v784_v2 = vld [vmem:[#allocation2 + $0x8] sm:$0xff]  ;;  %v786_v3 = vld [vmem:[#allocation2 + $0x18] sm:$0xff]  ;;  %v790_v4 = vld [vmem:[#allocation2 + $0x20] sm:$0xff]  ;;  %v89_v17 = vrot.slane %v778_v0, 7  ;;  %v92_v21 = vrot.slane %v780_v1, 7  ;;  %vm177_vm1 = vcmask 1046528  }
  0x28   :  { %v792_v5 = vld [vmem:[#allocation2 + $0x28] sm:$0xff]  ;;  %v796_v6 = vld [vmem:[#allocation2 + $0x30] sm:$0xff]  ;;  %v798_v7 = vld [vmem:[#allocation2 + $0x38] sm:$0xff]  ;;  %v90_v18 = vrot.slane %v784_v2, 7  ;;  %v93_v24 = vrot.slane %v786_v3, 7  ;;  %v95_v40 = vrot.slane %v790_v4, 7 }
  0x29   :  { %v802_v8 = vld [vmem:[#allocation2 + $0x40] sm:$0xff]  ;;  %v804_v9 = vld [vmem:[#allocation2 + $0x48] sm:$0xff]  ;;  %v808_v10 = vld [vmem:[#allocation2 + $0x50] sm:$0xff]  ;;  %v129_v27 = vsub.f32 %v778_v0, %v89_v17  ;;  %v131_v33 = vsub.f32 %v780_v1, %v92_v21  ;;  %v96_v41 = vrot.slane %v792_v5, 7  ;;  %vm218_vm3 = vcmask 130048   ;;  %s737_s1 = smov 127  }
  0x2a   :  { %v810_v11 = vld [vmem:[#allocation2 + $0x58] sm:$0xff]  ;;  %v814_v12 = vld [vmem:[#allocation2 + $0x60] sm:$0xff]  ;;  %v816_v13 = vld [vmem:[#allocation2 + $0x68] sm:$0xff]  ;;  %v91_v23 = vsel %vm88_vm0, %v89_v17, %v90_v18  ;;  %v94_v31 = vsel %vm88_vm0, %v92_v21, %v93_v24  ;;  %vm220_vm5 = vcmask 129024   ;;  %v133_v60 = vsub.f32 %v790_v4, %v95_v40  ;;  %s738_s10 = smov [#allocation7]  }
  0x2b   :  { %262 = vrot.lane.b32.xlu0 %v784_v2, %s736_s6  ;;  %266 = vrot.lane.b32.xlu1 %v786_v3, %s736_s6  ;;  %v820_v14 = vld [vmem:[#allocation2 + $0x70] sm:$0xff]  ;;  %v822_v15 = vld [vmem:[#allocation2 + $0x78] sm:$0xff]  ;;  %v56_v16 = vld [vmem:[#allocation5] sm:$0xff]  ;;  %v130_v28 = vsub.f32 %v784_v2, %v91_v23  ;;  %v145_v35 = vmul.f32 %v129_v27, %v129_v27  ;;  %v132_v37 = vsub.f32 %v786_v3, %v94_v31  ;;  %v99_v17 = vrot.slane %v798_v7, 7  ;;  %s621_s11 = sshll.u32 %s738_s10, 4  ;;  %s622_s11 = int_to_ptr.vmem [resolvable:$true] %s621_s11 }
  0x2c   :  { %v57_v19 = vld [vmem:[#allocation5 + $0x8] sm:$0xff]  ;;  %v445_v20 = vsub.f32 %v778_v0, %v56_v16  ;;  %v58_v25 = vld [vmem:[#allocation5 + $0x10] sm:$0xff]  ;;  %v59_v34 = vld [vmem:[#allocation5 + $0x18] sm:$0xff]  ;;  %v147_v45 = vmul.f32 %v131_v33, %v131_v33  ;;  %v97_v52 = vsel %vm88_vm0, %v95_v40, %v96_v41  ;;  %v98_v16 = vrot.slane %v796_v6, 7  ;;  %s704_s12 = scalar_lea.vmem %s622_s11, 128  ;;  %p709_p3 = scmp.lt.s32.totalorder %s622_s11, %s622_s11 }
  0x2d   :  { %v446_v22 = vsub.f32 %v784_v2, %v57_v19  ;;  %v447_v29 = vsub.f32 %v780_v1, %v58_v25  ;;  %v146_v36 = vmul.f32 %v130_v28, %v130_v28  ;;  %v448_v42 = vsub.f32 %v786_v3, %v59_v34  ;;  %v60_v57 = vld [vmem:[#allocation5 + $0x20] sm:$0xff]  ;;  %p705_p2 = scmp.ne.s32.totalorder %s622_s11, %s704_s12  ;;  %p710_p4 = scmp.lt.s32.totalorder %s704_s12, %s704_s12 }
  0x2e   :  { %v461_v26 = vand.u32 2147483647, %v445_v20  ;;  %v178_v46 = vrot.slane %v145_v35, 1  ;;  %v148_v48 = vmul.f32 %v132_v37, %v132_v37  ;;  %v181_v55 = vrot.slane %v147_v45, 1  ;;  %v61_v35 = vld [vmem:[#allocation5 + $0x28] sm:$0xff] }
  0x2f   :  { %268 = vrot.lane.b32.xlu0 %v790_v4, %s736_s6  ;;  %270 = vrot.lane.b32.xlu1 %v792_v5, %s736_s6  ;;  %v462_v30 = vand.u32 2147483647, %v446_v22  ;;  %v463_v38 = vand.u32 2147483647, %v447_v29  ;;  %v179_v47 = vrot.slane %v146_v36, 1  ;;  %v134_v61 = vsub.f32 %v792_v5, %v97_v52  ;;  %p711_p5 = por %p710_p4, %p709_p3 }
  0x30   :  { %v493_v32 = vmul.f32 0.5, %v461_v26  ;;  %v631_v44 = vadd.f32 -0.5, %v461_v26  ;;  %vm477_vm2 = vcmp.lt.f32.partialorder %v461_v26, 1.0  ;;  %v464_v53 = vand.u32 2147483647, %v448_v42 }
  0x31   :  { %v494_v39 = vmul.f32 0.5, %v462_v30  ;;  %v495_v49 = vmul.f32 0.5, %v463_v38  ;;  %v632_v51 = vadd.f32 -0.5, %v462_v30  ;;  %vm478_vm4 = vcmp.lt.f32.partialorder %v462_v30, 1.0  ;;  %p712_p6 = pnand %p711_p5, %p705_p2 }
  0x32   :  { %v509_v43 = vmul.f32 %v493_v32, %v461_v26  ;;  %v633_v56 = vadd.f32 -0.5, %v463_v38  ;;  %v180_v58 = vsel %vm177_vm1, %v178_v46, %v179_v47  ;;  %v182_v59 = vrot.slane %v148_v48, 1  ;;  %v62_v46 = vld [vmem:[#allocation5 + $0x30] sm:$0xff] }
  0x33   :  { %272 = vrot.lane.b32.xlu0 %v796_v6, %s736_s6  ;;  %274 = vrot.lane.b32.xlu1 %v798_v7, %s736_s6  ;;  %v510_v50 = vmul.f32 %v494_v39, %v462_v30  ;;  %v511_v62 = vmul.f32 %v495_v49, %v463_v38  ;;  %vm479_vm6 = vcmp.lt.f32.partialorder %v463_v38, 1.0  ;;  %v496_v18 = vmul.f32 0.5, %v464_v53 }
  0x34   :  { %v541_v54 = vsel %vm477_vm2, %v509_v43, %v631_v44  ;;  %v449_v19 = vsub.f32 %v790_v4, %v60_v57  ;;  %v219_v21 = vsel %vm218_vm3, %v180_v58, 0.0  ;;  %v221_v22 = vsel %vm220_vm5, %v179_v47, 0.0 }
  0x35   :  { %v542_v63 = vsel %vm478_vm4, %v510_v50, %v632_v51  ;;  %v557_v20 = vsel %vm218_vm3, %v541_v54, 0.0  ;;  %v183_v24 = vsel %vm177_vm1, %v181_v55, %v182_v59  ;;  %v149_v25 = vmul.f32 %v133_v60, %v133_v60  ;;  %v63_v50 = vld [vmem:[#allocation5 + $0x38] sm:$0xff] }
  0x36   :  { %v558_v23 = vsel %vm218_vm3, %v542_v63, 0.0  ;;  %v150_v26 = vmul.f32 %v134_v61, %v134_v61  ;;  %v543_v27 = vsel %vm479_vm6, %v511_v62, %v633_v56  ;;  %v100_v28 = vsel %vm88_vm0, %v98_v16, %v99_v17 }
  0x37   :  { %276 = vrot.lane.b32.xlu0 %v802_v8, %s736_s6  ;;  %278 = vrot.lane.b32.xlu1 %v804_v9, %s736_s6  ;;  %v222_v29 = vadd.f32 %v221_v22, %v219_v21  ;;  %v512_v30 = vmul.f32 %v496_v18, %v464_v53  ;;  %v634_v31 = vadd.f32 -0.5, %v464_v53  ;;  %v465_v32 = vand.u32 2147483647, %v449_v19  ;;  %v64_v22 = vld [vmem:[#allocation5 + $0x40] sm:$0xff] }
  0x38   :  { %v559_v33 = vadd.f32 %v558_v23, %v557_v20  ;;  %vm480_vm7 = vcmp.lt.f32.partialorder %v464_v53, 1.0  ;;  %v223_v34 = vsel %vm218_vm3, %v183_v24, 0.0  ;;  %v184_v36 = vrot.slane %v149_v25, 1 }
  0x39   :  { %v185_v37 = vrot.slane %v150_v26, 1  ;;  %v135_v38 = vsub.f32 %v796_v6, %v98_v16  ;;  %v136_v39 = vsub.f32 %v798_v7, %v100_v28  ;;  %v560_v40 = vsel %vm218_vm3, %v543_v27, 0.0 }
  0x3a   :  { %v544_v41 = vsel %vm480_vm7, %v512_v30, %v634_v31  ;;  %v224_v42 = vadd.f32 %v223_v34, %v222_v29  ;;  %v497_v43 = vmul.f32 0.5, %v465_v32  ;;  %v450_v44 = vsub.f32 %v792_v5, %v61_v35 }
  0x3b   :  { %280 = vrot.lane.b32.xlu0 %v808_v10, %s736_s6  ;;  %282 = vrot.lane.b32.xlu1 %v810_v11, %s736_s6  ;;  %v225_v45 = vsel %vm220_vm5, %v182_v59, 0.0  ;;  %v561_v47 = vadd.f32 %v560_v40, %v559_v33  ;;  %v186_v48 = vsel %vm177_vm1, %v184_v36, %v185_v37  ;;  %v151_v49 = vmul.f32 %v135_v38, %v135_v38 }
  0x3c   :  { %v862_v51 = vmul.f32 %v136_v39, %v136_v39  ;;  %v562_v54 = vsel %vm218_vm3, %v544_v41, 0.0  ;;  %v635_v55 = vadd.f32 -0.5, %v465_v32  ;;  %v226_v58 = vadd.f32 %v225_v45, %v224_v42 }
  0x3d   :  { %v513_v60 = vmul.f32 %v497_v43, %v465_v32  ;;  %v466_v59 = vand.u32 2147483647, %v450_v44  ;;  %v451_v61 = vsub.f32 %v796_v6, %v62_v46  ;;  %vm481_vm8 = vcmp.lt.f32.partialorder %v465_v32, 1.0 }
  0x3e   :  { %v227_v62 = vsel %vm218_vm3, %v186_v48, 0.0  ;;  %v452_v63 = vsub.f32 %v798_v7, %v63_v50  ;;  %v187_v17 = vrot.slane %v151_v49, 1  ;;  %v188_v18 = vrot.slane %v862_v51, 1 }
  0x3f   :  { %284 = vrot.lane.b32.xlu0 %v814_v12, %s736_s6  ;;  %286 = vrot.lane.b32.xlu1 %v816_v13, %s736_s6  ;;  %v101_v19 = vrot.slane %v802_v8, 7  ;;  %v873_v21 = vadd.f32 %v562_v54, %v561_v47  ;;  %v545_v26 = vsel %vm481_vm8, %v513_v60, %v635_v55  ;;  %v498_v27 = vmul.f32 0.5, %v466_v59 }
  0x40   :  { %v228_v28 = vadd.f32 %v227_v62, %v226_v58  ;;  %v879_v29 = vand.u32 2147483647, %v451_v61  ;;  %v229_v30 = vsel %vm220_vm5, %v185_v37, 0.0  ;;  %vm482_vm9 = vcmp.lt.f32.partialorder %v466_v59, 1.0 }
  0x41   :  { %v636_v31 = vadd.f32 -0.5, %v466_v59  ;;  %v189_v34 = vsel %vm177_vm1, %v187_v17, %v188_v18  ;;  %v883_v35 = vand.u32 2147483647, %v452_v63  ;;  %v888_v38 = vsel %vm218_vm3, %v545_v26, 0.0  ;;  %v66_v17 = vld [vmem:[#allocation5 + $0x50] sm:$0xff] }
  0x42   :  { %v514_v41 = vmul.f32 %v498_v27, %v466_v59  ;;  %v230_v42 = vadd.f32 %v229_v30, %v228_v28  ;;  %v499_v43 = vmul.f32 0.5, %v879_v29  ;;  %v137_v44 = vsub.f32 %v802_v8, %v101_v19 }
  0x43   :  { %288 = vrot.lane.b32.xlu0 %v820_v14, %s736_s6  ;;  %290 = vrot.lane.b32.xlu1 %v822_v15, %s736_s6  ;;  %vm483_vm10 = vcmp.lt.f32.partialorder %v879_v29, 1.0  ;;  %v231_v45 = vsel %vm218_vm3, %v189_v34, 0.0  ;;  %v500_v48 = vmul.f32 0.5, %v883_v35  ;;  %v105_v50 = vrot.slane %v810_v11, 7 }
  0x44   :  { %v515_v58 = vmul.f32 %v499_v43, %v879_v29  ;;  %v232_v60 = vadd.f32 %v231_v45, %v230_v42  ;;  %v153_v61 = vmul.f32 %v137_v44, %v137_v44  ;;  %v233_v62 = vsel %vm220_vm5, %v188_v18, 0.0 }
  0x45   :  { %vm484_vm11 = vcmp.lt.f32.partialorder %v883_v35, 1.0  ;;  %v455_v30 = vsub.f32 %v808_v10, %v66_v17  ;;  %v69_v17 = vld [vmem:[#allocation5 + $0x68] sm:$0xff] }
  0x46   :  { %v927_v26 = vadd.f32 %v233_v62, %v232_v60  ;;  %v190_v27 = vrot.slane %v153_v61, 1 }
  0x99   :  { %v261_v52 = vpop.permute.xlu0 %260  ;;  %v265_v53 = vpop.permute.xlu1 %264 }
  0x9a   :  { %v308_v56 = vsub.f32 %v778_v0, %v261_v52  ;;  %v310_v57 = vsub.f32 %v780_v1, %v265_v53  ;;  %v102_v0 = vrot.slane %v804_v9, 7  ;;  %v637_v53 = vadd.f32 -0.5, %v879_v29 }
  0x9c   :  { %v324_v16 = vmul.f32 %v308_v56, %v308_v56  ;;  %v326_v23 = vmul.f32 %v310_v57, %v310_v57  ;;  %v103_v36 = vsel %vm88_vm0, %v101_v19, %v102_v0  ;;  %v546_v57 = vsel %vm482_vm9, %v514_v41, %v636_v31  ;;  %v67_v0 = vld [vmem:[#allocation5 + $0x58] sm:$0xff] }
  0x9d   :  { %v263_v20 = vpop.permute.xlu0 %262  ;;  %v267_v1 = vpop.permute.xlu1 %266  ;;  %v138_v46 = vsub.f32 %v804_v9, %v103_v36  ;;  %v516_v19 = vmul.f32 %v500_v48, %v883_v35  ;;  %v456_v34 = vsub.f32 %v810_v11, %v67_v0  ;;  %v566_v43 = vsel %vm218_vm3, %v546_v57, 0.0 }
  0x9e   :  { %v309_v24 = vsub.f32 %v784_v2, %v263_v20  ;;  %356 = vrot.lane.b32.xlu0 %v324_v16, %s737_s1  ;;  %v311_v25 = vsub.f32 %v786_v3, %v267_v1  ;;  %v453_v2 = vsub.f32 %v802_v8, %v64_v22  ;;  %v110_v0 = vrot.slane %v820_v14, 7 }
  0x9f   :  { %v913_v63 = vmul.f32 %v138_v46, %v138_v46  ;;  %v952_v48 = vand.u32 2147483647, %v456_v34 }
  0xa0   :  { %v325_v33 = vmul.f32 %v309_v24, %v309_v24  ;;  %v327_v39 = vmul.f32 %v311_v25, %v311_v25  ;;  %v900_v49 = vand.u32 2147483647, %v453_v2  ;;  %v68_v2 = vld [vmem:[#allocation5 + $0x60] sm:$0xff] }
  0xa1   :  { %v269_v3 = vpop.permute.xlu0 %268  ;;  %v271_v32 = vpop.permute.xlu1 %270  ;;  %v191_v31 = vrot.slane %v913_v63, 1  ;;  %v457_v46 = vsub.f32 %v814_v12, %v68_v2  ;;  %v70_v2 = vld [vmem:[#allocation5 + $0x70] sm:$0xff]  ;;  %vm488_vm15 = vcmp.lt.f32.partialorder %v952_v48, 1.0 }
  0xa2   :  { %360 = vrot.lane.b32.xlu0 %v326_v23, %s737_s1  ;;  %358 = vrot.lane.b32.xlu1 %v325_v33, %s737_s1  ;;  %v312_v37 = vsub.f32 %v790_v4, %v269_v3  ;;  %v313_v40 = vsub.f32 %v792_v5, %v271_v32  ;;  %v65_v4 = vld [vmem:[#allocation5 + $0x48] sm:$0xff]  ;;  %v104_v5 = vrot.slane %v808_v10, 7  ;;  %v501_v59 = vmul.f32 0.5, %v900_v49 }
  0xa3   :  { %v454_v16 = vsub.f32 %v804_v9, %v65_v4  ;;  %v921_v18 = vadd.f32 -0.5, %v900_v49  ;;  %v107_v3 = vrot.slane %v814_v12, 7  ;;  %vm485_vm12 = vcmp.lt.f32.partialorder %v900_v49, 1.0 }
  0xa4   :  { %v328_v47 = vmul.f32 %v312_v37, %v312_v37  ;;  %v329_v54 = vmul.f32 %v313_v40, %v313_v40  ;;  %v106_v20 = vsel %vm88_vm0, %v104_v5, %v105_v50  ;;  %v139_v28 = vsub.f32 %v808_v10, %v104_v5 }
  0xa5   :  { %v273_v51 = vpop.permute.xlu0 %272  ;;  %v275_v52 = vpop.permute.xlu1 %274  ;;  %v932_v33 = vand.u32 2147483647, %v454_v16  ;;  %v565_v37 = vadd.f32 %v888_v38, %v873_v21  ;;  %v517_v44 = vmul.f32 %v501_v59, %v900_v49  ;;  %v950_v38 = vand.u32 2147483647, %v455_v30 }
  0xa6   :  { %362 = vrot.lane.b32.xlu1 %v327_v39, %s737_s1  ;;  %v314_v55 = vsub.f32 %v796_v6, %v273_v51  ;;  %364 = vrot.lane.b32.xlu0 %v328_v47, %s737_s1  ;;  %v315_v56 = vsub.f32 %v798_v7, %v275_v52  ;;  %v638_v7 = vadd.f32 -0.5, %v883_v35  ;;  %v155_v45 = vmul.f32 %v139_v28, %v139_v28 }
  0xa7   :  { %v547_v47 = vsel %vm483_vm10, %v515_v58, %v637_v53  ;;  %v502_v21 = vmul.f32 0.5, %v932_v33  ;;  %v192_v51 = vsel %vm177_vm1, %v190_v27, %v191_v31  ;;  %v567_v52 = vadd.f32 %v566_v43, %v565_v37 }
  0xa8   :  { %v330_v6 = vmul.f32 %v314_v55, %v314_v55  ;;  %v331_v23 = vmul.f32 %v315_v56, %v315_v56  ;;  %v568_v55 = vsel %vm218_vm3, %v547_v47, 0.0  ;;  %v193_v56 = vrot.slane %v155_v45, 1 }
  0xa9   :  { %v277_v1 = vpop.permute.xlu0 %276  ;;  %v279_v22 = vpop.permute.xlu1 %278  ;;  %v141_v57 = vsub.f32 %v814_v12, %v107_v3  ;;  %v966_v58 = vand.u32 2147483647, %v457_v46  ;;  %v548_v60 = vsel %vm484_vm11, %v516_v19, %v638_v7  ;;  %v235_v16 = vsel %vm218_vm3, %v192_v51, 0.0 }
  0xaa   :  { %366 = vrot.lane.b32.xlu1 %v329_v54, %s737_s1  ;;  %v316_v24 = vsub.f32 %v802_v8, %v277_v1  ;;  %368 = vrot.lane.b32.xlu0 %v330_v6, %s737_s1  ;;  %v317_v25 = vsub.f32 %v804_v9, %v279_v22  ;;  %v140_v8 = vsub.f32 %v810_v11, %v106_v20  ;;  %v108_v9 = vrot.slane %v816_v13, 7 }
  0xab   :  { %v111_v20 = vrot.slane %v822_v15, 7  ;;  %v569_v1 = vadd.f32 %v568_v55, %v567_v52  ;;  %v570_v7 = vsel %vm218_vm3, %v548_v60, 0.0  ;;  %v549_v27 = vsel %vm485_vm12, %v517_v44, %v921_v18 }
  0xac   :  { %v332_v36 = vmul.f32 %v316_v24, %v316_v24  ;;  %v333_v40 = vmul.f32 %v317_v25, %v317_v25  ;;  %v954_v4 = vmul.f32 %v140_v8, %v140_v8  ;;  %v109_v50 = vsel %vm88_vm0, %v107_v3, %v108_v9 }
  0xad   :  { %v281_v32 = vpop.permute.xlu0 %280  ;;  %v283_v39 = vpop.permute.xlu1 %282  ;;  %v142_v62 = vsub.f32 %v816_v13, %v109_v50  ;;  %v518_v24 = vmul.f32 %v502_v21, %v932_v33  ;;  %v640_v25 = vadd.f32 -0.5, %v932_v33  ;;  %v157_v28 = vmul.f32 %v141_v57, %v141_v57 }
  0xae   :  { %370 = vrot.lane.b32.xlu1 %v331_v23, %s737_s1  ;;  %v318_v41 = vsub.f32 %v808_v10, %v281_v32  ;;  %372 = vrot.lane.b32.xlu0 %v332_v36, %s737_s1  ;;  %v319_v42 = vsub.f32 %v810_v11, %v283_v39  ;;  %v503_v23 = vmul.f32 0.5, %v950_v38  ;;  %v458_v30 = vsub.f32 %v816_v13, %v69_v17 }
  0xaf   :  { %vm486_vm13 = vcmp.lt.f32.partialorder %v932_v33, 1.0  ;;  %v158_v36 = vmul.f32 %v142_v62, %v142_v62  ;;  %v236_v8 = vadd.f32 %v235_v16, %v927_v26  ;;  %v237_v3 = vsel %vm220_vm5, %v191_v31, 0.0 }
  0xb0   :  { %v334_v10 = vmul.f32 %v318_v41, %v318_v41  ;;  %v335_v29 = vmul.f32 %v319_v42, %v319_v42  ;;  %v571_v9 = vadd.f32 %v570_v7, %v569_v1  ;;  %v112_v49 = vsel %vm88_vm0, %v110_v0, %v111_v20  ;;  %v71_v41 = vld [vmem:[#allocation5 + $0x78] sm:$0xff] }
  0xb1   :  { %v285_v11 = vpop.permute.xlu0 %284  ;;  %v287_v5 = vpop.permute.xlu1 %286  ;;  %v572_v18 = vsel %vm218_vm3, %v549_v27, 0.0  ;;  %v504_v33 = vmul.f32 0.5, %v952_v48  ;;  %v519_v26 = vmul.f32 %v503_v23, %v950_v38  ;;  %v641_v63 = vadd.f32 -0.5, %v950_v38 }
  0xb2   :  { %374 = vrot.lane.b32.xlu1 %v333_v40, %s737_s1  ;;  %v320_v53 = vsub.f32 %v814_v12, %v285_v11  ;;  %376 = vrot.lane.b32.xlu0 %v334_v10, %s737_s1  ;;  %v321_v54 = vsub.f32 %v816_v13, %v287_v5  ;;  %v194_v12 = vrot.slane %v954_v4, 1  ;;  %v550_v39 = vsel %vm486_vm13, %v518_v24, %v640_v25 }
  0xb3   :  { %v474_v31 = vand.u32 2147483647, %v458_v30  ;;  %v459_v37 = vsub.f32 %v820_v14, %v70_v2  ;;  %vm487_vm14 = vcmp.lt.f32.partialorder %v950_v38, 1.0  ;;  %v196_v40 = vrot.slane %v157_v28, 1 }
  0xb4   :  { %v336_v61 = vmul.f32 %v320_v53, %v320_v53  ;;  %v337_v22 = vmul.f32 %v321_v54, %v321_v54  ;;  %v195_v13 = vsel %vm177_vm1, %v193_v56, %v194_v12  ;;  %v238_v42 = vadd.f32 %v237_v3, %v236_v8 }
  0xb5   :  { %v289_v6 = vpop.permute.xlu0 %288  ;;  %v291_v59 = vpop.permute.xlu1 %290  ;;  %v239_v43 = vsel %vm218_vm3, %v195_v13, 0.0  ;;  %v573_v44 = vadd.f32 %v572_v18, %v571_v9  ;;  %v143_v45 = vsub.f32 %v820_v14, %v110_v0  ;;  %v144_v46 = vsub.f32 %v822_v15, %v112_v49 }
  0xb6   :  { %378 = vrot.lane.b32.xlu1 %v335_v29, %s737_s1  ;;  %v322_v35 = vsub.f32 %v820_v14, %v289_v6  ;;  %380 = vrot.lane.b32.xlu0 %v336_v61, %s737_s1  ;;  %v323_v19 = vsub.f32 %v822_v15, %v291_v59  ;;  %v197_v47 = vrot.slane %v158_v36, 1  ;;  %v574_v21 = vsel %vm218_vm3, %v550_v39, 0.0 }
  0xb7   :  { %v505_v10 = vmul.f32 0.5, %v966_v58  ;;  %v520_v4 = vmul.f32 %v504_v33, %v952_v48  ;;  %v642_v38 = vadd.f32 -0.5, %v952_v48  ;;  %v551_v11 = vsel %vm487_vm14, %v519_v26, %v641_v63 }
  0xb8   :  { %v338_v34 = vmul.f32 %v322_v35, %v322_v35  ;;  %v339_v32 = vmul.f32 %v323_v19, %v323_v19  ;;  %v460_v5 = vsub.f32 %v822_v15, %v71_v41  ;;  %v475_v50 = vand.u32 2147483647, %v459_v37 }
  0xb9   :  { %v240_v51 = vadd.f32 %v239_v43, %v238_v42  ;;  %v241_v14 = vsel %vm220_vm5, %v194_v12, 0.0  ;;  %v575_v52 = vadd.f32 %v574_v21, %v573_v44  ;;  %v159_v29 = vmul.f32 %v143_v45, %v143_v45 }
  0xba   :  { %382 = vrot.lane.b32.xlu1 %v337_v22, %s737_s1  ;;  %384 = vrot.lane.b32.xlu0 %v338_v34, %s737_s1  ;;  %v160_v53 = vmul.f32 %v144_v46, %v144_v46  ;;  %v198_v54 = vsel %vm177_vm1, %v196_v40, %v197_v47  ;;  %v576_v55 = vsel %vm218_vm3, %v551_v11, 0.0  ;;  %v506_v56 = vmul.f32 0.5, %v474_v31 }
  0xbb   :  { %v521_v57 = vmul.f32 %v505_v10, %v966_v58  ;;  %v643_v60 = vadd.f32 -0.5, %v966_v58  ;;  %v552_v61 = vsel %vm488_vm15, %v520_v4, %v642_v38  ;;  %vm489_vm0 = vcmp.lt.f32.partialorder %v966_v58, 1.0 }
  0xbc   :  { %v476_v15 = vand.u32 2147483647, %v460_v5  ;;  %v242_v48 = vadd.f32 %v241_v14, %v240_v51  ;;  %v577_v62 = vadd.f32 %v576_v55, %v575_v52  ;;  %v199_v16 = vrot.slane %v159_v29, 1 }
  0xbd   :  { %v200_v17 = vrot.slane %v160_v53, 1  ;;  %v243_v6 = vsel %vm218_vm3, %v198_v54, 0.0  ;;  %v578_v59 = vsel %vm218_vm3, %v552_v61, 0.0  ;;  %v507_v0 = vmul.f32 0.5, %v475_v50 }
  0xbe   :  { %386 = vrot.lane.b32.xlu1 %v339_v32, %s737_s1  ;;  %v522_v20 = vmul.f32 %v506_v56, %v474_v31  ;;  %v644_v12 = vadd.f32 -0.5, %v474_v31  ;;  %v553_v1 = vsel %vm489_vm0, %v521_v57, %v643_v60  ;;  %vm490_vm2 = vcmp.lt.f32.partialorder %v474_v31, 1.0 }
  0xbf   :  { %v244_v22 = vadd.f32 %v243_v6, %v242_v48  ;;  %v579_v35 = vadd.f32 %v578_v59, %v577_v62  ;;  %v201_v19 = vsel %vm177_vm1, %v199_v16, %v200_v17  ;;  %v245_v58 = vsel %vm220_vm5, %v197_v47, 0.0 }
  0xc0   :  { %v580_v7 = vsel %vm218_vm3, %v553_v1, 0.0  ;;  %v508_v23 = vmul.f32 0.5, %v476_v15  ;;  %v523_v24 = vmul.f32 %v507_v0, %v475_v50  ;;  %v645_v25 = vadd.f32 -0.5, %v475_v50 }
  0xc1   :  { %v554_v27 = vsel %vm490_vm2, %v522_v20, %v644_v12  ;;  %vm491_vm4 = vcmp.lt.f32.partialorder %v475_v50, 1.0  ;;  %v246_v28 = vadd.f32 %v245_v58, %v244_v22  ;;  %v581_v30 = vadd.f32 %v580_v7, %v579_v35 }
  0xc2   :  { %v247_v34 = vsel %vm218_vm3, %v201_v19, 0.0  ;;  %v582_v2 = vsel %vm218_vm3, %v554_v27, 0.0  ;;  %v524_v36 = vmul.f32 %v508_v23, %v476_v15  ;;  %v646_v8 = vadd.f32 -0.5, %v476_v15 }
  0xc3   :  { %v555_v3 = vsel %vm491_vm4, %v523_v24, %v645_v25  ;;  %vm492_vm6 = vcmp.lt.f32.partialorder %v476_v15, 1.0  ;;  %v248_v9 = vadd.f32 %v247_v34, %v246_v28  ;;  %v583_v32 = vadd.f32 %v582_v2, %v581_v30 }
  0xc4   :  { %v249_v49 = vsel %vm220_vm5, %v200_v17, 0.0  ;;  %v584_v13 = vsel %vm218_vm3, %v555_v3, 0.0  ;;  %v556_v18 = vsel %vm492_vm6, %v524_v36, %v646_v8  ;;  %vm404_vm1 = vcmask 121856  }
  0xc5   :  { %v250_v33 = vadd.f32 %v249_v49, %v248_v9  ;;  %v585_v26 = vadd.f32 %v584_v13, %v583_v32  ;;  %v586_v63 = vsel %vm218_vm3, %v556_v18, 0.0 }
  0xc7   :  { %v587_v39 = vadd.f32 %v586_v63, %v585_v26 }
  0xd9   :  { %251 = vadd.xlane.f32.xlu0 %v250_v33 }
  0xdd   :  { %588 = vadd.xlane.f32.xlu0 %v587_v39 }
 0x110   :  { %v357_v31 = vpop.permute.xlu0 %356 }
 0x111   :  { %v405_v41 = vsel %vm404_vm1, %v357_v31, 0.0 }
 0x114   :  { %v359_v37 = vpop.permute.xlu1 %358  ;;  %v361_v40 = vpop.permute.xlu0 %360 }
 0x115   :  { %v406_v42 = vsel %vm404_vm1, %v359_v37, 0.0  ;;  %v408_v44 = vsel %vm404_vm1, %v361_v40, 0.0 }
 0x116   :  { %v407_v43 = vadd.f32 %v406_v42, %v405_v41  ;;  %v597_v42 = vlaneseq }
 0x118   :  { %v409_v45 = vadd.f32 %v408_v44, %v407_v43  ;;  %v363_v46 = vpop.permute.xlu1 %362  ;;  %v365_v47 = vpop.permute.xlu0 %364  ;;  %v598_v43 = vshrl.u32 %v597_v42, 7  ;;  %v600_v44 = vand.u32 127, %v597_v42 }
 0x119   :  { %v410_v21 = vsel %vm404_vm1, %v363_v46, 0.0  ;;  %v412_v10 = vsel %vm404_vm1, %v365_v47, 0.0 }
 0x11a   :  { %v411_v4 = vadd.f32 %v410_v21, %v409_v45  ;;  %vm601_vm3 = vcmp.eq.s32.totalorder %v598_v43, 0  ;;  %vm606_vm5 = vcmp.eq.s32.totalorder %v600_v44, 2  ;;  %vm604_vm7 = vcmp.eq.s32.totalorder %v600_v44, 1 }
 0x11b   :  { %vm602_vm8 = vcmp.eq.s32.totalorder %v600_v44, 0  ;;  %vm607_vm9 = vmand %vm601_vm3, %vm606_vm5 }
 0x11c   :  { %v413_v38 = vadd.f32 %v412_v10, %v411_v4  ;;  %v367_v11 = vpop.permute.xlu1 %366  ;;  %v369_v5 = vpop.permute.xlu0 %368  ;;  %vm605_vm10 = vmand %vm601_vm3, %vm604_vm7 }
 0x11d   :  { %v414_v50 = vsel %vm404_vm1, %v367_v11, 0.0  ;;  %v416_v51 = vsel %vm404_vm1, %v369_v5, 0.0  ;;  %vm603_vm11 = vmand %vm601_vm3, %vm602_vm8 }
 0x11e   :  { %v415_v14 = vadd.f32 %v414_v50, %v413_v38 }
 0x120   :  { %v417_v52 = vadd.f32 %v416_v51, %v415_v14  ;;  %v371_v29 = vpop.permute.xlu1 %370  ;;  %v373_v53 = vpop.permute.xlu0 %372 }
 0x121   :  { %v418_v54 = vsel %vm404_vm1, %v371_v29, 0.0  ;;  %v420_v55 = vsel %vm404_vm1, %v373_v53, 0.0 }
 0x122   :  { %v419_v56 = vadd.f32 %v418_v54, %v417_v52 }
 0x124   :  { %v421_v57 = vadd.f32 %v420_v55, %v419_v56  ;;  %v375_v60 = vpop.permute.xlu1 %374  ;;  %v377_v61 = vpop.permute.xlu0 %376 }
 0x125   :  { %v422_v15 = vsel %vm404_vm1, %v375_v60, 0.0  ;;  %v424_v48 = vsel %vm404_vm1, %v377_v61, 0.0 }
 0x126   :  { %v423_v62 = vadd.f32 %v422_v15, %v421_v57 }
 0x128   :  { %v425_v16 = vadd.f32 %v424_v48, %v423_v62  ;;  %v379_v17 = vpop.permute.xlu1 %378  ;;  %v381_v6 = vpop.permute.xlu0 %380 }
 0x129   :  { %v426_v59 = vsel %vm404_vm1, %v379_v17, 0.0  ;;  %v428_v0 = vsel %vm404_vm1, %v381_v6, 0.0 }
 0x12a   :  { %v427_v20 = vadd.f32 %v426_v59, %v425_v16 }
 0x12c   :  { %v429_v12 = vadd.f32 %v428_v0, %v427_v20  ;;  %v383_v1 = vpop.permute.xlu1 %382  ;;  %v385_v22 = vpop.permute.xlu0 %384 }
 0x12d   :  { %v430_v35 = vsel %vm404_vm1, %v383_v1, 0.0  ;;  %v432_v19 = vsel %vm404_vm1, %v385_v22, 0.0 }
 0x12e   :  { %v431_v58 = vadd.f32 %v430_v35, %v429_v12 }
 0x130   :  { %v433_v7 = vadd.f32 %v432_v19, %v431_v58  ;;  %v387_v23 = vpop.permute.xlu1 %386 }
 0x131   :  { %v434_v24 = vsel %vm404_vm1, %v387_v23, 0.0 }
 0x132   :  { %v435_v25 = vadd.f32 %v434_v24, %v433_v7 }
 0x134   :  { %436 = vadd.xlane.f32.xlu1 %v435_v25 }
 0x166   :  { %v252_v27 = vpop.xlane.xlu0 %251 }
 0x167   :  { %v253_v28 = vrot.slane %v252_v27, 4 }
 0x169   :  { %v254_v30 = vadd.f32 %v253_v28, %v252_v27 }
 0x16a   :  { %v589_v3 = vpop.xlane.xlu0 %588 }
 0x16b   :  { %v255_v34 = vrot.slane %v254_v30, 2  ;;  %v590_v9 = vrot.slane %v589_v3, 4 }
 0x16d   :  { %v256_v2 = vadd.f32 %v255_v34, %v254_v30  ;;  %v591_v32 = vadd.f32 %v590_v9, %v589_v3 }
 0x16f   :  { %v257_v36 = vrot.slane %v256_v2, 1  ;;  %v592_v49 = vrot.slane %v591_v32, 2 }
 0x171   :  { %v258_v8 = vadd.f32 %v257_v36, %v256_v2  ;;  %v593_v26 = vadd.f32 %v592_v49, %v591_v32 }
 0x173   :  { %647 = vpush %v258_v8  ;;  %v594_v31 = vrot.slane %v593_v26, 1 }
 0x175   :  { %v595_v41 = vadd.f32 %v594_v31, %v593_v26 }
 0x1a4   :  { %s648_s7 = spop %647 }
 0x1a5   :  { %v612_v21 = vstv %s648_s7 }
 0x1c1   :  { %v437_v13 = vpop.xlane.xlu1 %436 }
 0x1c2   :  { %v438_v18 = vrot.slane %v437_v13, 4 }
 0x1c4   :  { %v439_v33 = vadd.f32 %v438_v18, %v437_v13 }
 0x1c6   :  { %v440_v63 = vrot.slane %v439_v33, 2 }
 0x1c8   :  { %v441_v39 = vadd.f32 %v440_v63, %v439_v33 }
 0x1ca   :  { %v442_v37 = vrot.slane %v441_v39, 1 }
 0x1cc   :  { %v443_v40 = vadd.f32 %v442_v37, %v441_v39 }
 0x1ce   :  { %649 = vpush %v443_v40 }
 0x1cf   :  { %651 = vpush %v595_v41 }
 0x1ff   :  { %s650_s8 = spop %649 }
 0x200   :  { %v610_v45 = vstv %s650_s8  ;;  %s652_s9 = spop %651 }
 0x201   :  { %v608_v46 = vstv %s652_s9 }
 0x202   :  { %v609_v47 = vsel %vm607_vm9, %v608_v46, 0.0 }
 0x203   :  { %v611_v10 = vsel %vm605_vm10, %v610_v45, %v609_v47 }
 0x204   :  { %v613_v4 = vsel %vm603_vm11, %v612_v21, %v611_v10 }
 0x205   :  { %614 = vst [vmem:[#allocation7] sm:$0xff] %v613_v4 }
 0x206   :  { %715 = shalt.err (!%p712_p6)
}
 0x207   :  { %s716_s15 = scalar_lea.hbm %s1059_s2, 128 }
 0x208   :  { %p717_p7 = scmp.ne.s32.totalorder %s1059_s2, %s716_s15  ;;  %p720_p8 = scmp.lt.u32.totalorder %s716_s15, %s1059_s2 }
 0x20a   :  { %p722_p9 = pnand %p720_p8, %p717_p7 }
 0x20c   :  { %725 = shalt.err (!%p722_p9)
}
 0x20d   :  { %624 = dma.vmem_to_hbm [thread:$0]  %s622_s11, 128, %s1059_s2, [#allocation4]  }
 0x20e   :  { %730 = dma.done.wait [#allocation4], 128  }
 0x20f   :  { %731 = vsyncadd [#allocation4], 4294967168 }
 0x210   :  { %628 = vsyncpa [#allocation3], 1 }
 0x211   :  { %629 = vsyncpa [#allocation6], 1 }
 0x212   :  { %630 = vsyncpa [#allocation4], 1 }

</bundles_post_ra>
